<compile_context>
chip_gen: v5e
topology: v5e:2x2
jax: 0.10.0
libtpu: 0.0.40
codegen_flags: <defaults>
</compile_context>

<pallas_src>
import functools
import math

import jax
import jax.numpy as jnp
from jax import lax
from jax.experimental import pallas as pl
from jax.experimental.pallas import tpu as pltpu


# ----------------------------- hardware-aware sizing -----------------------------

@functools.lru_cache(maxsize=None)
def _hw_profile():
    """Generation-aware block / VMEM budgets (falls back to the most conservative v7x
    numbers if the hardware query is unavailable)."""
    vmem = 64 << 20
    try:
        info = pltpu.get_tpu_info()
        for name in ("vmem_capacity_bytes", "vmem_size_bytes", "vmem_bytes"):
            v = getattr(info, name, None)
            if v:
                vmem = int(v)
                break
    except Exception:
        pass
    if vmem >= (100 << 20):
        # v5e / v6e: 128 MiB VMEM, single TensorCore -> big A blocks amortize the per-step
        # overhead and lengthen DMAs; no minimum grid-step constraint (no megacore split).
        return {"a_block_cap": 28 << 20, "vmem_clamp": 100 << 20, "min_steps": 1}
    # v7x-class: 64 MiB VMEM, 2 TensorCores -> leave headroom for Mosaic scratch and keep
    # >= 2 grid steps per core so BlockSpec double-buffering still overlaps DMA/compute.
    return {"a_block_cap": 8 << 20, "vmem_clamp": 52 << 20, "min_steps": 4}


def _padded_bytes(shape, dtype):
    """VMEM footprint of one block: last dim padded to 128 lanes, second-to-last padded to
    the dtype's sublane tile (8 for 4-byte, 16 for 2-byte, 32 for 1-byte)."""
    s = list(shape)
    it = jnp.dtype(dtype).itemsize
    if len(s) >= 1:
        s[-1] = -(-s[-1] // 128) * 128
    if len(s) >= 2:
        sub = 8 * max(1, 4 // it)
        s[-2] = -(-s[-2] // sub) * sub
    return math.prod(s) * it


def _plan(B, a_bytes_fn, block_list_fn, prof, batch_block=None):
    """Pick the samples-per-step Bt (largest divisor of B that respects the per-step A cap,
    the VMEM budget and the min-grid-steps constraint) and the vmem_limit to request."""
    def step_bytes(bt):
        return sum(_padded_bytes(s, d) for s, d in block_list_fn(bt))

    if batch_block is None:
        bt = 1
        need_steps = min(prof["min_steps"], B)
        for cand in range(1, B + 1):
            if B % cand:
                continue
            if cand > 1:
                if B // cand < need_steps:
                    break
                if a_bytes_fn(cand) > prof["a_block_cap"]:
                    break
                if 2 * step_bytes(cand) + (2 << 20) > prof["vmem_clamp"]:
                    break
            bt = cand
    else:
        bt = batch_block
    assert B % bt == 0, (B, bt)
    vmem_limit = int(min(max(2 * step_bytes(bt) + (2 << 20), 4 << 20), prof["vmem_clamp"]))
    return bt, vmem_limit


# ----------------------------- fused GraphConv core -----------------------------

def _gconv_core(x, a, masks, w, b, gate_col, dmask_col, omask_col):
    """Fused pooling-apply + GraphConv for one block of Bt batch samples.

    x     : (Bt, N, Cin)  previous-layer features (any float dtype, upcast to f32)
    a     : (Bt, N, N)    ORIGINAL adjacency block (int8 / bf16 / f32), upcast in-kernel
    masks : (Bt, N, 2)    packed per-node vectors; columns selected by *_col (static ints)
    w     : (Cin, Cout)   Linear weight, already in the matmul dtype
    b     : (1, Cout)     Linear bias, f32
    """
    Bt, N, Cin = x.shape
    Cout = w.shape[1]
    cdt = w.dtype                                    # matmul operand dtype (bf16 by default)

    x = x.astype(jnp.float32)
    gate = masks[:, :, gate_col:gate_col + 1]        # (Bt, N, 1) f32
    dmask = masks[:, :, dmask_col:dmask_col + 1]
    omask = masks[:, :, omask_col:omask_col + 1]

    a_mm = a if a.dtype == cdt else a.astype(cdt)    # int8 -> bf16 upcast hidden under DMA

    # Degree of A_hat = mask*A*mask^T + I via a matvec on the already-resident A block.
    # (Kernel is HBM-bound, so this extra MXU pass sits in slack.)  Row sums equal the
    # reference's column sums because the pipeline's adjacency is symmetric.
    deg = jnp.einsum('bij,bjk->bik', a_mm, dmask.astype(cdt),
                     preferred_element_type=jnp.float32) + 1.0       # (Bt, N, 1)
    d = lax.rsqrt(deg + 1e-5)                                        # EUP, f32

    # Pooling gate fused in: x_l = h_{l-1} * tanh(y) * mask (gate == 1 at layer 0).
    xg = x * gate
    dx = d * xg
    # L @ x without materializing L: d * (A @ (d*x) + d*x)  [+I folded algebraically].
    # Column/row masking of A is unnecessary: gated x is zero on removed nodes and the
    # degree already uses the masked row sums, so results match m*A*m^T + I exactly
    # (removed rows are zeroed by omask below).
    adx = jnp.einsum('bij,bjc->bic', a_mm, dx.astype(cdt),
                     preferred_element_type=jnp.float32)             # (Bt, N, Cin)
    lx = d * (adx + dx)

    # Linear over Bt*N rows at once (N padded to a multiple of 8 -> relayout-free reshape).
    h = jnp.dot(lx.reshape(Bt * N, Cin).astype(cdt), w,
                preferred_element_type=jnp.float32) + b              # (Bt*N, Cout) f32
    h = h.reshape(Bt, N, Cout) * omask
    return jnp.maximum(h, 0.0)                                       # ReLU, f32


def gconv_pool_proj_kernel(x_ref, a_ref, m_ref, w_ref, b_ref, p_ref, h_ref, y_ref,
                           *, gate_col, dmask_col, omask_col):
    h = _gconv_core(x_ref[...], a_ref[...], m_ref[...], w_ref[...], b_ref[...],
                    gate_col, dmask_col, omask_col)
    h_ref[...] = h.astype(h_ref.dtype)               # bf16 store halves the h HBM traffic
    # Fused projection score y = h @ (p / ||p||) computed from the f32 h; stored lane-dense
    # as (Bt, 1, N) so the output is not a last-dim-1 masked store.
    y_ref[...] = jnp.sum(h * p_ref[...], axis=-1)[:, None, :]


def gconv_readout_kernel(x_ref, a_ref, m_ref, w_ref, b_ref, wfc_ref, bfc_ref, o_ref,
                         *, gate_col, dmask_col, omask_col):
    h = _gconv_core(x_ref[...], a_ref[...], m_ref[...], w_ref[...], b_ref[...],
                    gate_col, dmask_col, omask_col)
    # Fused readout epilogue: max over nodes + final Linear; h never goes to HBM.
    xm = jnp.max(h, axis=1)                                          # (Bt, Cout) f32
    out = jnp.dot(xm, wfc_ref[...], preferred_element_type=jnp.float32) + bfc_ref[...]
    o_ref[...] = out[:, None, :]                                     # (Bt, 1, O)


# ----------------------------- pallas_call wrappers -----------------------------

def gconv_pool_proj(x, A, masks, W, b, p_scaled, *, dmask_col, h_dtype, batch_block=None):
    B, N, Cin = x.shape
    Cout = W.shape[1]
    prof = _hw_profile()

    def block_list(bt):
        return [((bt, N, Cin), x.dtype), ((bt, N, N), A.dtype), ((bt, N, 2), masks.dtype),
                ((Cin, Cout), W.dtype), ((1, Cout), b.dtype), ((1, Cout), p_scaled.dtype),
                ((bt, N, Cout), h_dtype), ((bt, 1, N), jnp.float32)]

    Bt, vmem_limit = _plan(B, lambda bt: _padded_bytes((bt, N, N), A.dtype),
                           block_list, prof, batch_block)
    kernel = functools.partial(gconv_pool_proj_kernel,
                               gate_col=0, dmask_col=dmask_col, omask_col=1)
    # NOTE: on 128-MiB-VMEM parts pl.Buffered(3) on the A spec could hide residual DMA
    # exposure; left at the default depth to keep the v7x VMEM budget safe.
    h, y = pl.pallas_call(
        kernel,
        out_shape=(jax.ShapeDtypeStruct((B, N, Cout), h_dtype),
                   jax.ShapeDtypeStruct((B, 1, N), jnp.float32)),
        grid_spec=pltpu.PrefetchScalarGridSpec(
            num_scalar_prefetch=0,
            grid=(B // Bt,),
            in_specs=[
                pl.BlockSpec((Bt, N, Cin), lambda i: (i, 0, 0)),
                pl.BlockSpec((Bt, N, N), lambda i: (i, 0, 0)),
                pl.BlockSpec((Bt, N, 2), lambda i: (i, 0, 0)),
                pl.BlockSpec((Cin, Cout), lambda i: (0, 0)),
                pl.BlockSpec((1, Cout), lambda i: (0, 0)),
                pl.BlockSpec((1, Cout), lambda i: (0, 0)),
            ],
            out_specs=[
                pl.BlockSpec((Bt, N, Cout), lambda i: (i, 0, 0)),
                pl.BlockSpec((Bt, 1, N), lambda i: (i, 0, 0)),
            ],
        ),
        compiler_params=pltpu.CompilerParams(
            dimension_semantics=("parallel",),
            vmem_limit_bytes=vmem_limit),
    )(x, A, masks, W, b, p_scaled)
    return h, y[:, 0, :]


def gconv_readout(x, A, masks, W, b, Wfc, bfc, *, dmask_col, batch_block=None):
    B, N, Cin = x.shape
    Cout = W.shape[1]
    O = Wfc.shape[1]
    prof = _hw_profile()

    def block_list(bt):
        return [((bt, N, Cin), x.dtype), ((bt, N, N), A.dtype), ((bt, N, 2), masks.dtype),
                ((Cin, Cout), W.dtype), ((1, Cout), b.dtype),
                ((Cout, O), Wfc.dtype), ((1, O), bfc.dtype), ((bt, 1, O), jnp.float32)]

    Bt, vmem_limit = _plan(B, lambda bt: _padded_bytes((bt, N, N), A.dtype),
                           block_list, prof, batch_block)
    kernel = functools.partial(gconv_readout_kernel,
                               gate_col=0, dmask_col=dmask_col, omask_col=1)
    out = pl.pallas_call(
        kernel,
        out_shape=jax.ShapeDtypeStruct((B, 1, O), jnp.float32),
        grid_spec=pltpu.PrefetchScalarGridSpec(
            num_scalar_prefetch=0,
            grid=(B // Bt,),
            in_specs=[
                pl.BlockSpec((Bt, N, Cin), lambda i: (i, 0, 0)),
                pl.BlockSpec((Bt, N, N), lambda i: (i, 0, 0)),
                pl.BlockSpec((Bt, N, 2), lambda i: (i, 0, 0)),
                pl.BlockSpec((Cin, Cout), lambda i: (0, 0)),
                pl.BlockSpec((1, Cout), lambda i: (0, 0)),
                pl.BlockSpec((Cout, O), lambda i: (0, 0)),
                pl.BlockSpec((1, O), lambda i: (0, 0)),
            ],
            out_specs=pl.BlockSpec((Bt, 1, O), lambda i: (i, 0, 0)),
        ),
        compiler_params=pltpu.CompilerParams(
            dimension_semantics=("parallel",),
            vmem_limit_bytes=vmem_limit),
    )(x, A, masks, W, b, Wfc, bfc)
    return out[:, 0, :]


# ----------------------------- plain-JAX glue -----------------------------

def update_mask(y, mask, N_nodes, ratio):
    # Same as the PyTorch loop: remove the N_remove lowest-scoring *currently-masked*
    # nodes per batch (sort ascending, restrict to masked nodes, drop the first N_remove).
    N_remove = (N_nodes.astype(jnp.float32) * (1.0 - ratio)).astype(jnp.int32)
    N_nodes_new = N_nodes - N_remove
    order = jnp.argsort(y, axis=1)                                 # ascending, like torch.sort
    m_sorted = jnp.take_along_axis(mask, order, axis=1)
    rank = jnp.cumsum(m_sorted, axis=1)                            # 1-based rank among masked
    remove_sorted = (m_sorted > 0) & (rank <= N_remove[:, None].astype(mask.dtype))
    inv = jnp.argsort(order, axis=1)
    remove = jnp.take_along_axis(remove_sorted, inv, axis=1)
    new_mask = jnp.where(remove, jnp.zeros_like(mask), mask)
    return new_mask, N_nodes_new


def init_params(key, in_features, out_features, filters):
    params = {'gconv': [], 'proj': [], 'fc': None}
    k = key
    cin = in_features
    for f in filters:
        k, k1, k2 = jax.random.split(k, 3)
        bound = 1.0 / math.sqrt(cin)
        W = jax.random.uniform(k1, (cin, f), jnp.float32, -bound, bound)   # nn.Linear weight^T
        b = jax.random.uniform(k2, (1, f), jnp.float32, -bound, bound)
        params['gconv'].append((W, b))
        cin = f
    for i, _ in enumerate(filters[:-1]):
        k, k1 = jax.random.split(k)
        bound = 1.0 / math.sqrt(filters[i])
        params['proj'].append(
            jax.random.uniform(k1, (filters[i], 1), jnp.float32, -bound, bound))
    k, k1, k2 = jax.random.split(k, 3)
    bound = 1.0 / math.sqrt(filters[-1])
    params['fc'] = (
        jax.random.uniform(k1, (filters[-1], out_features), jnp.float32, -bound, bound),
        jax.random.uniform(k2, (1, out_features), jnp.float32, -bound, bound),
    )
    return params


def graph_unet_forward(params, x, A, mask, N_nodes, pooling_ratios=(0.8, 0.8),
                       matmul_dtype=jnp.bfloat16, a_store_dtype=None):
    """a_store_dtype=jnp.int8 is exact for 0/1 adjacencies and halves the dominant HBM
    stream; leave None (-> matmul_dtype) for weighted adjacency matrices."""
    n_layers = len(params['gconv'])
    B, N0, _ = x.shape

    # Pad node count to a multiple of 8 so the (Bt*N, Cin) reshape is relayout-free and
    # sublane tiles are full.  Zero rows/cols are exact no-ops for this network (padded
    # rows carry mask 0, gated features 0 and ReLU >= 0, so max-readout is unchanged).
    N = -(-N0 // 8) * 8
    if N != N0:
        pad_n = N - N0
        x = jnp.pad(x, ((0, 0), (0, pad_n), (0, 0)))
        A = jnp.pad(A, ((0, 0), (0, pad_n), (0, pad_n)))
        mask = jnp.pad(mask, ((0, 0), (0, pad_n)))

    # A never changes across layers (mask*A*mask^T is folded into each kernel): cast once
    # to a compact storage dtype and re-use the same HBM buffer for every layer.
    a_dt = a_store_dtype or matmul_dtype
    A_st = A.astype(a_dt)
    ones = jnp.ones((B, N), jnp.float32)
    h_dtype = jnp.bfloat16 if matmul_dtype == jnp.bfloat16 else jnp.float32

    gate = ones            # layer 0: no pooling gate on x
    cur_mask = mask.astype(jnp.float32)
    cur_N = N_nodes
    data_x = x
    dmask_col = 0          # layer 0: degree mask = ones (raw adjacency), i.e. the gate column

    for layer in range(n_layers - 1):
        W, b = params['gconv'][layer]
        p = params['proj'][layer]
        Wc = W.astype(matmul_dtype)                                 # pre-cast once (no per-step cast)
        p_scaled = (p / jnp.sqrt(jnp.sum(p ** 2))).reshape(1, -1)   # fold 1/||p||; kept f32 (feeds argsort)
        masks = jnp.stack([gate, cur_mask], axis=-1)                # packed (B, N, 2): [gate, mask]
        h, y = gconv_pool_proj(data_x, A_st, masks, Wc, b, p_scaled,
                               dmask_col=dmask_col, h_dtype=h_dtype)
        new_mask, cur_N = update_mask(y, cur_mask, cur_N, pooling_ratios[layer])
        # Pooling is fused into the NEXT layer's kernel:
        #   x_{l+1} = h * tanh(y) * new_mask   -> gate column
        #   A_{l+1} = m*A*m^T                  -> degree mask + gated x inside the kernel
        gate = jnp.tanh(y) * new_mask
        cur_mask = new_mask
        data_x = h
        dmask_col = 1      # layers > 0: degree mask == output mask == cur_mask (column 1)

    W, b = params['gconv'][-1]
    Wfc, bfc = params['fc']
    masks = jnp.stack([gate, cur_mask], axis=-1)
    # TODO(synk): Dropout(p=0.2) treated as identity (eval-mode forward); n_hidden=0 path only.
    return gconv_readout(data_x, A_st, masks, W.astype(matmul_dtype), b, Wfc, bfc,
                         dmask_col=dmask_col)


if __name__ == "__main__":
    key = jax.random.PRNGKey(0)
    B, N, Cin, Cout = 2, 16, 8, 8
    filters = [32, 32, 32]

    kx, ka, kp = jax.random.split(key, 3)
    N_nodes = jnp.array([16, 12], dtype=jnp.int32)
    node_ids = jnp.arange(N)[None, :]
    mask = (node_ids < N_nodes[:, None]).astype(jnp.float32)              # (B, N)

    x = jax.random.normal(kx, (B, N, Cin), jnp.float32) * mask[..., None]
    A_rand = (jax.random.uniform(ka, (B, N, N)) > 0.5).astype(jnp.float32)
    A = jnp.maximum(A_rand, jnp.swapaxes(A_rand, 1, 2))                   # symmetric
    A = A * (1.0 - jnp.eye(N, dtype=jnp.float32)[None])                   # zero diagonal
    A = A * mask[:, :, None] * mask[:, None, :]                           # respect node mask

    params = init_params(kp, Cin, Cout, filters)

    # Binary adjacency -> ship A as int8 (exact 0/1), upcast to bf16 inside the kernel.
    out = graph_unet_forward(params, x, A, mask, N_nodes, a_store_dtype=jnp.int8)
    out = jax.block_until_ready(out)
    assert out.shape == (B, Cout), out.shape
    assert jnp.all(jnp.isfinite(out))
    print("KERNEL_OK")
</pallas_src>

<mosaic_0001>
module attributes {stable_mosaic.version = 11 : i64} {
  func.func @gconv_pool_proj_kernel(%arg0: i32, %arg1: memref<1x16x8xf32, #tpu.memory_space<vmem>>, %arg2: memref<1x16x16xi8, #tpu.memory_space<vmem>>, %arg3: memref<1x16x2xf32, #tpu.memory_space<vmem>>, %arg4: memref<8x32xbf16, #tpu.memory_space<vmem>>, %arg5: memref<1x32xf32, #tpu.memory_space<vmem>>, %arg6: memref<1x32xf32, #tpu.memory_space<vmem>>, %arg7: memref<1x16x32xbf16, #tpu.memory_space<vmem>>, %arg8: memref<1x1x16xf32, #tpu.memory_space<vmem>>) attributes {dimension_semantics = [#tpu.dimension_semantics<parallel>], iteration_bounds = array<i64: 2>, scalar_prefetch = 0 : i64, scratch_operands = 0 : i64, tpu.core_type = #tpu.core_type<tc>, window_params = [{transform_indices = @transform_0, window_bounds = array<i64: 1, 16, 8>}, {transform_indices = @transform_1, window_bounds = array<i64: 1, 16, 16>}, {transform_indices = @transform_2, window_bounds = array<i64: 1, 16, 2>}, {pipeline_mode = #tpu.pipeline_mode<synchronous>, transform_indices = @transform_3, window_bounds = array<i64: 8, 32>}, {pipeline_mode = #tpu.pipeline_mode<synchronous>, transform_indices = @transform_4, window_bounds = array<i64: 1, 32>}, {pipeline_mode = #tpu.pipeline_mode<synchronous>, transform_indices = @transform_5, window_bounds = array<i64: 1, 32>}, {transform_indices = @transform_6, window_bounds = array<i64: 1, 16, 32>}, {transform_indices = @transform_7, window_bounds = array<i64: 1, 1, 16>}]} {
    %c0 = arith.constant 0 : index
    %c0_0 = arith.constant 0 : index
    %c0_1 = arith.constant 0 : index
    %0 = vector.load %arg1[%c0, %c0_0, %c0_1] : memref<1x16x8xf32, #tpu.memory_space<vmem>>, vector<1x16x8xf32>
    %c0_2 = arith.constant 0 : index
    %c0_3 = arith.constant 0 : index
    %c0_4 = arith.constant 0 : index
    %1 = vector.load %arg2[%c0_2, %c0_3, %c0_4] : memref<1x16x16xi8, #tpu.memory_space<vmem>>, vector<1x16x16xi8>
    %c0_5 = arith.constant 0 : index
    %c0_6 = arith.constant 0 : index
    %c0_7 = arith.constant 0 : index
    %2 = vector.load %arg3[%c0_5, %c0_6, %c0_7] : memref<1x16x2xf32, #tpu.memory_space<vmem>>, vector<1x16x2xf32>
    %c0_8 = arith.constant 0 : index
    %c0_9 = arith.constant 0 : index
    %3 = vector.load %arg4[%c0_8, %c0_9] : memref<8x32xbf16, #tpu.memory_space<vmem>>, vector<8x32xbf16>
    %c0_10 = arith.constant 0 : index
    %c0_11 = arith.constant 0 : index
    %4 = vector.load %arg5[%c0_10, %c0_11] : memref<1x32xf32, #tpu.memory_space<vmem>>, vector<1x32xf32>
    %5 = vector.extract_strided_slice %2 {offsets = [0, 0, 0], sizes = [1, 16, 1], strides = [1, 1, 1]} : vector<1x16x2xf32> to vector<1x16x1xf32>
    %6 = vector.extract_strided_slice %2 {offsets = [0, 0, 0], sizes = [1, 16, 1], strides = [1, 1, 1]} : vector<1x16x2xf32> to vector<1x16x1xf32>
    %7 = vector.extract_strided_slice %2 {offsets = [0, 0, 1], sizes = [1, 16, 1], strides = [1, 1, 1]} : vector<1x16x2xf32> to vector<1x16x1xf32>
    %8 = arith.sitofp %1 : vector<1x16x16xi8> to vector<1x16x16xbf16>
    %9 = arith.truncf %6 : vector<1x16x1xf32> to vector<1x16x1xbf16>
    "tpu.trace_start"() <{level = 10 : i32, message = "bij,bjk->bik"}> : () -> ()
    %cst = arith.constant dense<0.000000e+00> : vector<1x16x1xf32>
    %10 = tpu.matmul %8, %9, %cst {dimension_numbers = #tpu.dot_dimension_numbers<[2], [1], [1], [2], [0, 0, 0, 1, 1, 2], [0], [0]>} : vector<1x16x16xbf16>, vector<1x16x1xbf16>, vector<1x16x1xf32> -> vector<1x16x1xf32>
    "tpu.trace_stop"() : () -> ()
    %cst_12 = arith.constant 1.000000e+00 : f32
    %11 = vector.broadcast %cst_12 : f32 to vector<1x16x1xf32>
    %12 = arith.addf %10, %11 : vector<1x16x1xf32>
    %cst_13 = arith.constant 9.99999974E-6 : f32
    %13 = vector.broadcast %cst_13 : f32 to vector<1x16x1xf32>
    %14 = arith.addf %12, %13 : vector<1x16x1xf32>
    %15 = math.rsqrt %14 : vector<1x16x1xf32>
    %16 = vector.broadcast %5 : vector<1x16x1xf32> to vector<1x16x8xf32>
    %17 = arith.mulf %0, %16 : vector<1x16x8xf32>
    %18 = vector.broadcast %15 : vector<1x16x1xf32> to vector<1x16x8xf32>
    %19 = arith.mulf %18, %17 : vector<1x16x8xf32>
    %20 = arith.truncf %19 : vector<1x16x8xf32> to vector<1x16x8xbf16>
    "tpu.trace_start"() <{level = 10 : i32, message = "bij,bjc->bic"}> : () -> ()
    %cst_14 = arith.constant dense<0.000000e+00> : vector<1x16x8xf32>
    %21 = tpu.matmul %8, %20, %cst_14 {dimension_numbers = #tpu.dot_dimension_numbers<[2], [1], [1], [2], [0, 0, 0, 1, 1, 2], [0], [0]>} : vector<1x16x16xbf16>, vector<1x16x8xbf16>, vector<1x16x8xf32> -> vector<1x16x8xf32>
    "tpu.trace_stop"() : () -> ()
    %22 = arith.addf %21, %19 : vector<1x16x8xf32>
    %23 = vector.broadcast %15 : vector<1x16x1xf32> to vector<1x16x8xf32>
    %24 = arith.mulf %23, %22 : vector<1x16x8xf32>
    %25 = vector.shape_cast %24 : vector<1x16x8xf32> to vector<16x8xf32>
    %26 = arith.truncf %25 : vector<16x8xf32> to vector<16x8xbf16>
    %cst_15 = arith.constant dense<0.000000e+00> : vector<16x32xf32>
    %27 = tpu.matmul %26, %3, %cst_15 {dimension_numbers = #tpu.dot_dimension_numbers<[1], [0], [0], [1], [0, 0, 1, 1], [], []>} : vector<16x8xbf16>, vector<8x32xbf16>, vector<16x32xf32> -> vector<16x32xf32>
    %28 = vector.broadcast %4 : vector<1x32xf32> to vector<16x32xf32>
    %29 = arith.addf %27, %28 : vector<16x32xf32>
    %30 = vector.shape_cast %29 : vector<16x32xf32> to vector<1x16x32xf32>
    %31 = vector.broadcast %7 : vector<1x16x1xf32> to vector<1x16x32xf32>
    %32 = arith.mulf %30, %31 : vector<1x16x32xf32>
    %cst_16 = arith.constant 0.000000e+00 : f32
    %33 = vector.broadcast %cst_16 : f32 to vector<1x16x32xf32>
    %34 = arith.maximumf %32, %33 : vector<1x16x32xf32>
    %35 = arith.truncf %34 : vector<1x16x32xf32> to vector<1x16x32xbf16>
    %c0_17 = arith.constant 0 : index
    %c0_18 = arith.constant 0 : index
    %c0_19 = arith.constant 0 : index
    %36 = vector.load %arg7[%c0_17, %c0_18, %c0_19] : memref<1x16x32xbf16, #tpu.memory_space<vmem>>, vector<1x16x32xbf16>
    tpu.vector_store %arg7[%c0_17, %c0_18, %c0_19], %35 {strides = array<i32>} : memref<1x16x32xbf16, #tpu.memory_space<vmem>>, vector<1x16x32xbf16>,
    %c0_20 = arith.constant 0 : index
    %c0_21 = arith.constant 0 : index
    %37 = vector.load %arg6[%c0_20, %c0_21] : memref<1x32xf32, #tpu.memory_space<vmem>>, vector<1x32xf32>
    %38 = vector.shape_cast %37 : vector<1x32xf32> to vector<1x1x32xf32>
    %39 = vector.broadcast %38 : vector<1x1x32xf32> to vector<1x16x32xf32>
    %40 = arith.mulf %34, %39 : vector<1x16x32xf32>
    %cst_22 = arith.constant dense<0.000000e+00> : vector<1x16xf32>
    %41 = vector.multi_reduction <add>, %40, %cst_22 [2] : vector<1x16x32xf32> to vector<1x16xf32>
    %42 = vector.shape_cast %41 : vector<1x16xf32> to vector<1x1x16xf32>
    %c0_23 = arith.constant 0 : index
    %c0_24 = arith.constant 0 : index
    %c0_25 = arith.constant 0 : index
    %43 = vector.load %arg8[%c0_23, %c0_24, %c0_25] : memref<1x1x16xf32, #tpu.memory_space<vmem>>, vector<1x1x16xf32>
    tpu.vector_store %arg8[%c0_23, %c0_24, %c0_25], %42 {strides = array<i32>} : memref<1x1x16xf32, #tpu.memory_space<vmem>>, vector<1x1x16xf32>,
    return
  }
  func.func @transform_0(%arg0: i32) -> (i32, i32, i32) {
    %c0_i32 = arith.constant 0 : i32
    %c0_i32_0 = arith.constant 0 : i32
    %c0_i32_1 = arith.constant 0 : i32
    return %arg0, %c0_i32, %c0_i32_0 : i32, i32, i32
  }
  func.func @transform_1(%arg0: i32) -> (i32, i32, i32) {
    %c0_i32 = arith.constant 0 : i32
    %c0_i32_0 = arith.constant 0 : i32
    %c0_i32_1 = arith.constant 0 : i32
    return %arg0, %c0_i32, %c0_i32_0 : i32, i32, i32
  }
  func.func @transform_2(%arg0: i32) -> (i32, i32, i32) {
    %c0_i32 = arith.constant 0 : i32
    %c0_i32_0 = arith.constant 0 : i32
    %c0_i32_1 = arith.constant 0 : i32
    return %arg0, %c0_i32, %c0_i32_0 : i32, i32, i32
  }
  func.func @transform_3(%arg0: i32) -> (i32, i32) {
    %c0_i32 = arith.constant 0 : i32
    %c0_i32_0 = arith.constant 0 : i32
    %c0_i32_1 = arith.constant 0 : i32
    return %c0_i32, %c0_i32_0 : i32, i32
  }
  func.func @transform_4(%arg0: i32) -> (i32, i32) {
    %c0_i32 = arith.constant 0 : i32
    %c0_i32_0 = arith.constant 0 : i32
    %c0_i32_1 = arith.constant 0 : i32
    return %c0_i32, %c0_i32_0 : i32, i32
  }
  func.func @transform_5(%arg0: i32) -> (i32, i32) {
    %c0_i32 = arith.constant 0 : i32
    %c0_i32_0 = arith.constant 0 : i32
    %c0_i32_1 = arith.constant 0 : i32
    return %c0_i32, %c0_i32_0 : i32, i32
  }
  func.func @transform_6(%arg0: i32) -> (i32, i32, i32) {
    %c0_i32 = arith.constant 0 : i32
    %c0_i32_0 = arith.constant 0 : i32
    %c0_i32_1 = arith.constant 0 : i32
    return %arg0, %c0_i32, %c0_i32_0 : i32, i32, i32
  }
  func.func @transform_7(%arg0: i32) -> (i32, i32, i32) {
    %c0_i32 = arith.constant 0 : i32
    %c0_i32_0 = arith.constant 0 : i32
    %c0_i32_1 = arith.constant 0 : i32
    return %arg0, %c0_i32, %c0_i32_0 : i32, i32, i32
  }
}

</mosaic_0001>

<bundles_post_ra>
// kernel: tpu_custom_call.1
= control target key start
LH: loop header
LB: loop body
LE: loop exit
PB: predicated region body
PF: predicated region fallthrough
CT: control target
= control target key end

     0   :  { %13 = vsyncpa [#allocation3], 0  ;;  %s1029_s0 = inlined_call_operand.vmem [shape: f32[2,16,8], index: 0, kind: input, shape index: {}]   ;;  %s1030_s1 = inlined_call_operand.vmem [shape: s8[2,16,16], index: 1, kind: input, shape index: {}]   ;;  %s1031_s2 = inlined_call_operand.vmem [shape: f32[2,16,2], index: 2, kind: input, shape index: {}]   ;;  %s1032_s3 = inlined_call_operand.vmem [shape: bf16[8,32], index: 3, kind: input, shape index: {}]   ;;  %s1033_s4 = inlined_call_operand.vmem [shape: f32[1,32], index: 4, kind: input, shape index: {}]   ;;  %s1034_s5 = inlined_call_operand.vmem [shape: f32[1,32], index: 5, kind: input, shape index: {}]   ;;  %s1035_s6 = inlined_call_operand.hbm [shape: bf16[2,16,32], index: 6, kind: output, shape index: {0}]   ;;  %s1036_s7 = inlined_call_operand.hbm [shape: f32[2,1,16], index: 7, kind: output, shape index: {1}]  }
   0x1   :  { %15 = vsyncpa [#allocation3 + $0x1], 0 }
   0x2   :  { %16 = vsyncpa [#allocation5], 0 }
   0x3   :  { %18 = vsyncpa [#allocation5 + $0x1], 0  ;;  %s883_s24 = smov 0   ;;  %s885_s25 = smov 0  }
   0x4   :  { %s887_s26 = smov 0   ;;  %s889_s27 = smov 0  }
   0x5 LB: > { %s904_s28 = sadd.s32 4294967295, %s837_s27   ;;  %s658_s29 = sadd.s32 4294967294, %s837_s27   ;;  %s837_s27 = sphi %s889_s27, %s1042_s27   ;;  %s833_s26 = sphi %s887_s26, %s1041_s26   ;;  %s829_s25 = sphi %s885_s25, %s1040_s25   ;;  %s825_s24 = sphi %s883_s24, %s1039_s24  }
   0x6   : > { %s908_s30 = sadd.s32 1, %s837_s27   ;;  %s172_s8 = sadd.s32 1, %s833_s26 }
   0x7   : > { %s169_s9 = ssub.s32 %s837_s27, %s908_s30  ;;  %p182_p0 = scmp.ne.s32.totalorder %s833_s26, %s829_s25 }
   0x8   : > { %p170_p1 = scmp.eq.s32.totalorder %s169_s9, 0  ;;  %p183_p2 = scmp.eq.s32.totalorder %s904_s28, 1 }
   0x9   : > { %p188_p3 = scmp.ne.s32.totalorder %s829_s25, %s825_s24  ;;  %p189_p4 = scmp.eq.s32.totalorder %s658_s29, 1 }
   0xa   : > { %s919_s10 = scalar_select %p170_p1, %s833_s26, %s172_s8  }
   0xb   : > { %p921_p5 = por %p183_p2, %p182_p0  ;;  %p925_p6 = por %p189_p4, %p188_p3 }
   0xc   : > { %p661_p7 = scmp.ge.s32.totalorder %s837_s27, 1  ;;  %p266_p8 = scmp.lt.s32.totalorder %s837_s27, 3 }
   0xe   : > { %p267_p9 = pnand %p661_p7, %p266_p8 }
   0xf   : > { %p312_p10 = scmp.lt.s32.totalorder (!%p267_p9), %s904_s28, 1  ;;  %s680_s19 = sshll.u32 (!%p267_p9), %s904_s28, 3 }
  0x10   : > { %270 = sbr.rel (%p267_p9) target bundleno = 730 (0x2da), region = 44  ;;  %s527_s22 = scalar_lea.hbm (!%p267_p9), %s1035_s6, %s680_s19 }
  0x11   : > { %s530_s8 = sshll.u32 (!%p267_p9), %s527_s22, 4  ;;  %s531_s8 = int_to_ptr.hbm [resolvable:$true] %s530_s8 }
  0x15   : > { %s933_s13 = scalar_select %p312_p10, %s904_s28, 1  ;;  %vm355_vm0 = vcmask 130048   ;;  %v839_v17 = vmov 0   ;;  %v334_v53 = vld [vmem:[%s1032_s3] sm:$0xf]  ;;  %vm451_vm7 = vcmask 1043456  }
  0x16   : > { %733 = vset.pattern.permute.xlu0 %v839_v17  ;;  %734 = vset.pattern.permute.xlu1 %v839_v17  ;;  %v453_v54 = vsel %vm451_vm7, %v334_v53, 0  ;;  %v840_v55 = vmov 1   ;;  %vm447_vm8 = vcmask 64512   ;;  %v737_v63 = vld [vmem:[%s1033_s4] ss:$0 sm:$0xff]  ;;  %vm483_vm9 = vcmask 257024  }
  0x17   : > { %s677_s14 = sshll.u32 %s933_s13, 4  ;;  %s678_s15 = sshll.u32 %s933_s13, 2  ;;  %462 = vmatpush.bf16.msra.mxu2 %v453_v54  ;;  %735 = vset.pattern.permute.xlu2 %v840_v55  ;;  %vm492_vm10 = vcmask 261120  }
  0x18   : > { %s326_s18 = scalar_lea.vmem %s1031_s2, %s677_s14  ;;  %s321_s21 = scalar_lea.vmem %s1030_s1, %s678_s15 }
  0x19   : > { %v945_v0 = vld [vmem:[%s326_s18] sm:$0xff]  ;;  %v947_v1 = vld [vmem:[%s326_s18 + $0x8] sm:$0xff]  ;;  %s316_s29 = scalar_lea.vmem %s1029_s0, %s677_s14  ;;  %s971_s15 = sand.u32 1, %s829_s25  }
  0x1a   : > { %v682_v2 = vld [vmem:[%s321_s21] sm:$0xf]   ;;  %v342_v3 = vpack.c.bf16 %v945_v0, %v945_v0  ;;  %v343_v4 = vpack.c.bf16 %v947_v1, %v947_v1  ;;  %397 = vperm.xlu0 %733, %v945_v0   ;;  %v329_v43 = vld [vmem:[%s316_s29 + $0x8] sm:$0xff]  ;;  %470 = vperm.xlu2 %735, %v945_v0   ;;  %s662_s16 = sshll.u32 %s971_s15, 3  ;;  %s512_s9 = scalar_lea.sflag [#allocation3], %s971_s15 }
  0x1b   : > { %v683_v5 = vunpack.c.0.s8 %v682_v2  ;;  %v684_v6 = vunpack.c.1.s8 %v682_v2  ;;  %v328_v39 = vld [vmem:[%s316_s29] sm:$0xff]  ;;  %s305_s23 = scalar_lea.vmem [#allocation2], %s662_s16  ;;  %s757_s13 = sshra.s32 %s531_s8, 4  ;;  %s758_s13 = int_to_ptr.hbm [resolvable:$true] %s757_s13 }
  0x1c   : > { %v351_v7 = vunpack.c.l.b16 %v342_v3  ;;  %v352_v8 = vunpack.c.l.b16 %v343_v4  ;;  %v738_v4 = vld [vmem:[%s1034_s5] ss:$0 sm:$0xff]  ;;  %s528_s29 = sshll.u32 %s305_s23, 4  ;;  %s759_s14 = scalar_lea.hbm %s758_s13, 8  ;;  %s529_s29 = int_to_ptr.vmem [resolvable:$true] %s528_s29 }
  0x1d   : > { %v338_v9 = vcvt.s32.f32 %v683_v5  ;;  %v339_v10 = vcvt.s32.f32 %v684_v6  ;;  %p760_p11 = scmp.ne.s32.totalorder %s758_s13, %s759_s14  ;;  %s763_s18 = scalar_lea.hbm %s1035_s6, 16 }
  0x1e   : > { %v353_v11 = vpack.c.b16 %v352_v8, %v351_v7  ;;  %p764_p0 = scmp.lt.s32.totalorder %s758_s13, %s1035_s6  ;;  %p765_p1 = scmp.lt.s32.totalorder %s763_s18, %s759_s14 }
  0x1f   : > { %v340_v12 = vpack.c.bf16 %v338_v9, %v338_v9  ;;  %v341_v13 = vpack.c.bf16 %v339_v10, %v339_v10  ;;  %p761_p12 = pnand %p760_p11, %p921_p5 }
  0x20   : > { %366 = vmatpush.bf16.msra.mxu0 %v353_v11  ;;  %p766_p2 = por %p765_p1, %p764_p0 }
  0x21   : > { %v346_v14 = vunpack.c.l.b16 %v340_v12  ;;  %v347_v15 = vunpack.c.l.b16 %v341_v13  ;;  %p762_p13 = pneg %p761_p12 }
  0x22   : > { %402 = vperm.xlu0 %733, %v947_v1   ;;  %474 = vperm.xlu2 %735, %v947_v1  }
  0x23   : > { %v348_v16 = vpack.c.b16 %v347_v15, %v346_v14  ;;  %p767_p3 = pnand %p766_p2, %p762_p13 }
  0x25   : > { %669 = vmatmul.msk.bf16.vlgmr.msra.gmra.mxu0 %vm355_vm0, %v348_v16 }
  0x2a   : > { %736 = vset.pattern.permute.xlu0 %v840_v55 }
  0x74   : > { %v471_v2 = vpop.permute.xlu2 %470 }
  0x7c   : > { %v475_v11 = vpop.permute.xlu2 %474 }
  0x8c   : > { %v398_v38 = vpop.permute.xlu0 %397 }
  0x8d   : > { %v405_v41 = vmul.f32 %v398_v38, %v328_v39 }
  0x94   : > { %v403_v42 = vpop.permute.xlu0 %402 }
  0x95   : > { %v406_v45 = vmul.f32 %v403_v42, %v329_v43 }
  0xa2   : > { %v368_v18 = vpop.f32.mrf.mxu0 }
  0xa3   : > { %v369_v19 = vadd.f32 1.0, %v368_v18 }
  0xa5   : > { %v373_v20 = vadd.f32 1e-05, %v369_v19 }
  0xa7   : > { %739 = vrsqrt.f32 %v373_v20  ;;  %vm381_vm2 = vweird.f32 %v373_v20 }
  0xaa   : > { %v370_v21 = vpop.f32.mrf.mxu0 }
  0xab   : > { %v371_v22 = vadd.f32 1.0, %v370_v21 }
  0xad   : > { %v740_v23 = vpop.eup %739  ;;  %v374_v24 = vadd.f32 1e-05, %v371_v22 }
  0xae   : > { %v376_v25 = vmul.f32 %v740_v23, %v373_v20  ;;  %vm382_vm1 = vweird.f32 %v740_v23 }
  0xaf   : > { %741 = vrsqrt.f32 %v374_v24  ;;  %vm383_vm3 = vmor %vm381_vm2, %vm382_vm1  ;;  %vm391_vm5 = vweird.f32 %v374_v24 }
  0xb0   : > { %v377_v26 = vmul.f32 %v740_v23, %v376_v25 }
  0xb2   : > { %v378_v27 = vmul.f32 0.5, %v377_v26 }
  0xb4   : > { %v379_v28 = vsub.f32 1.5, %v378_v27 }
  0xb5   : > { %v742_v29 = vpop.eup %741 }
  0xb6   : > { %v386_v30 = vmul.f32 %v742_v29, %v374_v24  ;;  %v380_v31 = vmul.f32 %v740_v23, %v379_v28  ;;  %vm392_vm4 = vweird.f32 %v742_v29 }
  0xb7   : > { %vm393_vm6 = vmor %vm391_vm5, %vm392_vm4 }
  0xb8   : > { %v387_v32 = vmul.f32 %v742_v29, %v386_v30  ;;  %v384_v33 = vsel %vm383_vm3, %v740_v23, %v380_v31 }
  0xb9   : > { %409 = vperm.xlu1 %734, %v384_v33  }
  0xba   : > { %v388_v34 = vmul.f32 0.5, %v387_v32 }
  0xbc   : > { %v389_v35 = vsub.f32 1.5, %v388_v34 }
  0xbe   : > { %v390_v36 = vmul.f32 %v742_v29, %v389_v35 }
  0xc0   : > { %v394_v37 = vsel %vm393_vm6, %v742_v29, %v390_v36 }
  0xc1   : > { %414 = vperm.xlu1 %734, %v394_v37  }
 0x12b   : > { %v410_v40 = vpop.permute.xlu1 %409 }
 0x12c   : > { %v417_v44 = vmul.f32 %v410_v40, %v405_v41 }
 0x12e   : > { %v419_v48 = vpack.c.bf16 %v417_v44, %v417_v44 }
 0x130   : > { %v423_v50 = vunpack.c.l.b16 %v419_v48 }
 0x133   : > { %v415_v46 = vpop.permute.xlu1 %414 }
 0x134   : > { %v418_v47 = vmul.f32 %v415_v46, %v406_v45 }
 0x136   : > { %v420_v49 = vpack.c.bf16 %v418_v47, %v418_v47 }
 0x138   : > { %v424_v51 = vunpack.c.l.b16 %v420_v49 }
 0x13a   : > { %v425_v52 = vpack.c.b16 %v424_v51, %v423_v50 }
 0x13c   : > { %434 = vmatpush.bf16.msra.mxu1 %v425_v52 }
 0x13f   : > { %670 = vmatmul.msk.bf16.vlgmr.msra.gmra.mxu1 %vm355_vm0, %v348_v16 }
 0x1bc   : > { %v436_v56 = vpop.f32.mrf.mxu1 }
 0x1bd   : > { %v437_v57 = vadd.f32 %v436_v56, %v417_v44 }
 0x1bf   : > { %v441_v60 = vmul.f32 %v437_v57, %v410_v40 }
 0x1c4   : > { %v438_v58 = vpop.f32.mrf.mxu1 }
 0x1c5   : > { %v439_v59 = vadd.f32 %v438_v58, %v418_v47 }
 0x1c7   : > { %v442_v61 = vmul.f32 %v439_v59, %v415_v46 }
 0x1c9   : > { %v443_v62 = vpack.c.bf16 %v442_v61, %v441_v60 }
 0x1cb   : > { %671 = vmatmul.msk.bf16.vlgmr.msra.gmra.mxu2 %vm447_vm8, %v443_v62 }
 0x24e   : > { %v464_v0 = vpop.f32.mrf.mxu2 }
 0x24f   : > { %v465_v1 = vadd.f32 %v737_v63, %v464_v0 }
 0x251   : > { %v477_v3 = vmul.f32 %v471_v2, %v465_v1 }
 0x253   : > { %v479_v5 = vmax.f32 %v477_v3, 0.0 }
 0x255   : > { %v481_v6 = vpack.c.bf16 %v479_v5, %v479_v5  ;;  %v490_v7 = vmul.f32 %v738_v4, %v479_v5 }
 0x256   : > { %v466_v8 = vpop.f32.mrf.mxu2 }
 0x257   : > { %484 = vst.msk [vmem:[%s305_s23] sm:$0xf] %vm483_vm9, %v481_v6  ;;  %v467_v9 = vadd.f32 %v737_v63, %v466_v8  ;;  %v493_v10 = vsel %vm492_vm10, %v490_v7, 0.0 }
 0x258   : > { %494 = vadd.xlane.f32.xlu0 %v493_v10 }
 0x259   : > { %v478_v12 = vmul.f32 %v475_v11, %v467_v9 }
 0x25b   : > { %v480_v13 = vmax.f32 %v478_v12, 0.0 }
 0x25d   : > { %v482_v14 = vpack.c.bf16 %v480_v13, %v480_v13  ;;  %v491_v15 = vmul.f32 %v738_v4, %v480_v13 }
 0x25f   : > { %485 = vst.msk [vmem:[%s305_s23 + $0x4] sm:$0xf] %vm483_vm9, %v482_v14  ;;  %v496_v16 = vsel %vm492_vm10, %v491_v15, 0.0 }
 0x260   : > { %497 = vadd.xlane.f32.xlu1 %v496_v16 }
 0x261   : > { %770 = shalt.err (!%p767_p3)
}
 0x262   : > { %s841_s21 = smov 64   ;;  %s842_s22 = smov 4   ;;  %v501_v17 = vlaneseq  ;;  %vm506_vm11 = vcmask 130112   ;;  %vm509_vm12 = vcmask 122880  }
 0x263   : > { %685 = dma.vmem_to_hbm [thread:$0]  (%p921_p5), %s529_s29, 128, %s531_s8, %s512_s9, %s841_s21, %s841_s21, %s842_s22  }
 0x264   : > { %v502_v18 = vand.u32 127, %v501_v17  ;;  %s542_s17 = scalar_lea.hbm %s1036_s7, %s904_s28  ;;  %s311_s13 = scalar_lea.vmem [#allocation4], %s971_s15 }
 0x265   : > { %s544_s14 = sshll.u32 %s311_s13, 4  ;;  %s546_s18 = sshll.u32 %s542_s17, 4  ;;  %s545_s14 = int_to_ptr.vmem [resolvable:$true] %s544_s14  ;;  %s547_s18 = int_to_ptr.hbm [resolvable:$true] %s546_s18 }
 0x266   : > { %v504_v19 = vadd.s32 4294967288, %v502_v18  ;;  %s517_s29 = scalar_lea.sflag [#allocation5], %s971_s15  ;;  %s785_s8 = sshra.s32 %s547_s18, 4  ;;  %s786_s8 = int_to_ptr.hbm [resolvable:$true] %s785_s8 }
 0x267   : > { %s787_s9 = scalar_lea.hbm %s786_s8, 1  ;;  %s791_s20 = scalar_lea.hbm %s1036_s7, 2 }
 0x268   : > { %p788_p4 = scmp.ne.s32.totalorder %s786_s8, %s787_s9  ;;  %p792_p9 = scmp.lt.s32.totalorder %s786_s8, %s1036_s7 }
 0x269   : > { %p793_p10 = scmp.lt.s32.totalorder %s791_s20, %s787_s9 }
 0x26a   : > { %p789_p7 = pnand %p788_p4, %p921_p5 }
 0x26b   : > { %p794_p11 = por %p793_p10, %p792_p9 }
 0x26c   : > { %p790_p8 = pneg %p789_p7 }
 0x26e   : > { %p795_p12 = pnand %p794_p11, %p790_p8 }
 0x2cb   : > { %v495_v20 = vpop.xlane.xlu0 %494 }
 0x2cc   : > { %v503_v22 = vperm.slane %v495_v20, %v502_v18 }
 0x2d3   : > { %v498_v21 = vpop.xlane.xlu1 %497 }
 0x2d4   : > { %v505_v23 = vperm.slane %v498_v21, %v504_v19 }
 0x2d6   : > { %v507_v24 = vsel %vm506_vm11, %v505_v23, %v503_v22 }
 0x2d7   : > { %510 = vst.msk [vmem:[%s311_s13] sm:$0x1] %vm509_vm12, %v507_v24 }
 0x2d8   : > { %798 = shalt.err (!%p795_p12)
}
 0x2d9   : > { %686 = dma.vmem_to_hbm [thread:$0]  (%p921_p5), %s545_s14, 16, %s547_s18, %s517_s29  }
 0x2da PF: > { %p696_p13 = scmp.ge.s32.totalorder %s837_s27, 2  ;;  %s558_s15 = sand.u32 1, %s825_s24  }
 0x2db   : > { %s559_s23 = scalar_lea.sflag [#allocation3], %s558_s15 }
 0x2dc   : > { %p690_p0 = pnand %p696_p13, %p925_p6 }
 0x2de   : > { %p691_p1 = pneg %p690_p0 }
 0x2e0   : > { %816 = dma.done.wait (%p691_p1), %s559_s23, 128  }
 0x2e1   : > { %818 = vsyncadd (%p691_p1), %s559_s23, 4294967168  ;;  %s569_s16 = scalar_lea.sflag [#allocation5], %s558_s15 }
 0x2e2   : > { %820 = dma.done.wait (%p691_p1), %s569_s16, 16  }
 0x2e3   : > { %822 = vsyncadd (%p691_p1), %s569_s16, 4294967280  ;;  %p21_p5 = scmp.ge.s32.totalorder %s908_s30, 4   ;;  %s1039_s24 = smov %s829_s25 }
 0x2e4   : > { %s1040_s25 = smov %s833_s26  ;;  %s1041_s26 = smov %s919_s10 }
 0x2e5   : > { %s1042_s27 = smov %s908_s30  ;;  %23 = sbr.rel (!%p21_p5) target bundleno = 5 (0x5), region = 102 }
 0x2ea   :  { %574 = vsyncpa [#allocation3], 1 }
 0x2eb   :  { %576 = vsyncpa [#allocation3 + $0x1], 1 }
 0x2ec   :  { %577 = vsyncpa [#allocation5], 1 }
 0x2ed   :  { %579 = vsyncpa [#allocation5 + $0x1], 1 }

</bundles_post_ra>
